<compile_context>
chip_gen: v5e
topology: v5e:2x2
jax: 0.10.0
libtpu: 0.0.40
codegen_flags: <defaults>
</compile_context>

<pallas_src>
import functools

import jax
import jax.numpy as jnp
from jax.experimental import pallas as pl
from jax.experimental.pallas import tpu as pltpu


def _ca_cga_kernel(x_ref, w1t_ref, b1_ref, w2t_ref, b2_ref, out_ref, acc_ref,
                   *, inv_hw):
    # x_ref:   (tile_n, C, hw_tile)  one spatial slab of the input (native dtype)
    # w1t_ref: (C, Ch)    b1_ref: (1, Ch)
    # w2t_ref: (Ch, C)    b2_ref: (1, C)
    # out_ref: (tile_n, C)
    # acc_ref: (tile_n, C) f32 scratch, persists across the HW reduction axis
    hw_step = pl.program_id(1)

    @pl.when(hw_step == 0)
    def _():
        acc_ref[...] = jnp.zeros_like(acc_ref)

    # Partial spatial sum. dtype=f32 accumulates in f32 during the reduce
    # without materializing a full f32 copy of the (possibly bf16) block.
    acc_ref[...] += jnp.sum(x_ref[...], axis=-1, dtype=jnp.float32)

    @pl.when(hw_step == pl.num_programs(1) - 1)
    def _():
        # Global average pool finalize: divide by the TRUE H*W exactly once
        # (padded lanes were zero-filled, so they only touch the sum, not the
        # divisor).
        gap = acc_ref[...] * inv_hw                                # (tile_n, C)
        # 1x1 conv #1 (C -> Ch) + bias + ReLU.
        h = jnp.dot(gap, w1t_ref[...], preferred_element_type=jnp.float32)
        h = jnp.maximum(h + b1_ref[...], 0.0)                      # (tile_n, Ch)
        # 1x1 conv #2 (Ch -> C) + bias.
        o = jnp.dot(h, w2t_ref[...], preferred_element_type=jnp.float32)
        out_ref[...] = (o + b2_ref[...]).astype(out_ref.dtype)


def channel_attention_cga(x_nchw, w1, b1, w2, b2,
                          *, hw_tile_max=2048, vmem_budget_bytes=4 << 20):
    """x_nchw: (N, C, H, W); w1: (Ch, C); b1: (Ch,); w2: (C, Ch); b2: (C,).

    Returns (N, C, 1, 1) matching the PyTorch module.
    """
    N, C, H, W = x_nchw.shape
    Ch = w1.shape[0]
    HW = H * W
    itemsize = jnp.dtype(x_nchw.dtype).itemsize

    # --- N tiling: output block (tile_n, C) must have tile_n % 8 == 0 or == N.
    if N % 8 == 0 and N > 8:
        tile_n = 8
    else:
        tile_n = N
    n_tiles = N // tile_n

    # --- HW tiling: lane-aligned (multiple of 128), sized so one x buffer is
    # <= ~4 MiB -> 2 pipeline buffers + params + accumulator fit comfortably in
    # scoped VMEM on every generation (v5e 16 MiB default ... v7x 64 MiB phys),
    # while staying large enough that per-grid-step overhead is negligible.
    max_lanes = max(128, (vmem_budget_bytes // (tile_n * C * itemsize)) // 128 * 128)
    hw_tile = min(hw_tile_max, max_lanes)
    hw_rounded = ((HW + 127) // 128) * 128
    if hw_rounded <= hw_tile:
        hw_tile = hw_rounded          # whole spatial extent in a single slab
    hw_padded = ((HW + hw_tile - 1) // hw_tile) * hw_tile
    hw_tiles = hw_padded // hw_tile

    # Flatten spatial and zero-pad the ragged tail (zeros are safe for the sum).
    x_flat = x_nchw.reshape(N, C, HW)
    if hw_padded != HW:
        x_flat = jnp.pad(x_flat, ((0, 0), (0, 0), (0, hw_padded - HW)))

    # Pre-transpose weights once in the wrapper (no in-kernel XLU transpose).
    w1t = jnp.transpose(w1)           # (C, Ch)
    w2t = jnp.transpose(w2)           # (Ch, C)
    b1_2d = b1.reshape(1, Ch)
    b2_2d = b2.reshape(1, C)

    kernel = functools.partial(_ca_cga_kernel, inv_hw=1.0 / float(HW))

    out = pl.pallas_call(
        kernel,
        out_shape=jax.ShapeDtypeStruct((N, C), x_nchw.dtype),
        grid_spec=pltpu.PrefetchScalarGridSpec(
            num_scalar_prefetch=0,
            grid=(n_tiles, hw_tiles),              # reduction (HW) axis last
            in_specs=[
                # x: advances with both grid axes.
                pl.BlockSpec((tile_n, C, hw_tile), lambda n, s: (n, 0, s)),
                # Parameters: constant index_maps -> fetched once, not per step.
                pl.BlockSpec((C, Ch), lambda n, s: (0, 0)),
                pl.BlockSpec((1, Ch), lambda n, s: (0, 0)),
                pl.BlockSpec((Ch, C), lambda n, s: (0, 0)),
                pl.BlockSpec((1, C), lambda n, s: (0, 0)),
            ],
            # Same output block across the HW axis -> resident accumulator slot;
            # only written on the final HW step.
            out_specs=pl.BlockSpec((tile_n, C), lambda n, s: (n, 0)),
            scratch_shapes=[pltpu.VMEM((tile_n, C), jnp.float32)],
        ),
        compiler_params=pltpu.CompilerParams(
            dimension_semantics=("parallel", "arbitrary")),
    )(x_flat, w1t, b1_2d, w2t, b2_2d)

    return out.reshape(N, C, 1, 1)


def _reference(x_nchw, w1, b1, w2, b2):
    gap = jnp.mean(x_nchw, axis=(2, 3))                  # (N, C)
    h = jnp.maximum(gap @ w1.T + b1, 0.0)                # (N, Ch)
    o = h @ w2.T + b2                                    # (N, C)
    return o[:, :, None, None]


if __name__ == "__main__":
    # dim=32, reduction=8 -> hidden=4; spatial 16x16, batch 2.
    N, C, H, W = 2, 32, 16, 16
    reduction = 8
    Ch = C // reduction

    key = jax.random.PRNGKey(0)
    kx, k1, k2, k3, k4 = jax.random.split(key, 5)

    x = jax.random.normal(kx, (N, C, H, W), dtype=jnp.float32)
    # Deterministic synthetic parameters (Conv2d 1x1 == dense over channels).
    w1 = jax.random.normal(k1, (Ch, C), dtype=jnp.float32) * 0.1
    b1 = jax.random.normal(k2, (Ch,), dtype=jnp.float32) * 0.1
    w2 = jax.random.normal(k3, (C, Ch), dtype=jnp.float32) * 0.1
    b2 = jax.random.normal(k4, (C,), dtype=jnp.float32) * 0.1

    out = channel_attention_cga(x, w1, b1, w2, b2)
    out = jax.block_until_ready(out)

    ref = _reference(x, w1, b1, w2, b2)
    assert out.shape == (N, C, 1, 1), out.shape
    assert jnp.allclose(out, ref, atol=1e-5, rtol=1e-5), float(
        jnp.max(jnp.abs(out - ref)))

    print("KERNEL_OK")
</pallas_src>

<mosaic_0001>
module attributes {stable_mosaic.version = 11 : i64} {
  func.func @_ca_cga_kernel(%arg0: i32, %arg1: i32, %arg2: memref<2x32x256xf32, #tpu.memory_space<vmem>>, %arg3: memref<32x4xf32, #tpu.memory_space<vmem>>, %arg4: memref<1x4xf32, #tpu.memory_space<vmem>>, %arg5: memref<4x32xf32, #tpu.memory_space<vmem>>, %arg6: memref<1x32xf32, #tpu.memory_space<vmem>>, %arg7: memref<2x32xf32, #tpu.memory_space<vmem>>, %arg8: memref<2x32xf32, #tpu.memory_space<vmem>>) attributes {dimension_semantics = [#tpu.dimension_semantics<parallel>, #tpu.dimension_semantics<arbitrary>], iteration_bounds = array<i64: 1, 1>, scalar_prefetch = 0 : i64, scratch_operands = 1 : i64, tpu.core_type = #tpu.core_type<tc>, window_params = [{transform_indices = @transform_0, window_bounds = array<i64: 2, 32, 256>}, {pipeline_mode = #tpu.pipeline_mode<synchronous>, transform_indices = @transform_1, window_bounds = array<i64: 32, 4>}, {pipeline_mode = #tpu.pipeline_mode<synchronous>, transform_indices = @transform_2, window_bounds = array<i64: 1, 4>}, {pipeline_mode = #tpu.pipeline_mode<synchronous>, transform_indices = @transform_3, window_bounds = array<i64: 4, 32>}, {pipeline_mode = #tpu.pipeline_mode<synchronous>, transform_indices = @transform_4, window_bounds = array<i64: 1, 32>}, {transform_indices = @transform_5, window_bounds = array<i64: 2, 32>}]} {
    %c0_i32 = arith.constant 0 : i32
    %0 = arith.cmpi eq, %arg1, %c0_i32 : i32
    %1 = arith.extui %0 : i1 to i32
    %c0_i32_0 = arith.constant 0 : i32
    %2 = arith.cmpi ne, %1, %c0_i32_0 : i32
    scf.if %2 {
      %cst_9 = arith.constant 0.000000e+00 : f32
      %11 = vector.broadcast %cst_9 : f32 to vector<2x32xf32>
      %c0_10 = arith.constant 0 : index
      %c0_11 = arith.constant 0 : index
      %12 = vector.load %arg8[%c0_10, %c0_11] : memref<2x32xf32, #tpu.memory_space<vmem>>, vector<2x32xf32>
      tpu.vector_store %arg8[%c0_10, %c0_11], %11 {strides = array<i32>} : memref<2x32xf32, #tpu.memory_space<vmem>>, vector<2x32xf32>,
    } else {
    }
    %c0 = arith.constant 0 : index
    %c0_1 = arith.constant 0 : index
    %3 = vector.load %arg8[%c0, %c0_1] : memref<2x32xf32, #tpu.memory_space<vmem>>, vector<2x32xf32>
    %c0_2 = arith.constant 0 : index
    %c0_3 = arith.constant 0 : index
    %c0_4 = arith.constant 0 : index
    %4 = vector.load %arg2[%c0_2, %c0_3, %c0_4] : memref<2x32x256xf32, #tpu.memory_space<vmem>>, vector<2x32x256xf32>
    %cst = arith.constant dense<0.000000e+00> : vector<2x32xf32>
    %5 = vector.multi_reduction <add>, %4, %cst [2] : vector<2x32x256xf32> to vector<2x32xf32>
    %6 = arith.addf %3, %5 : vector<2x32xf32>
    %c0_5 = arith.constant 0 : index
    %c0_6 = arith.constant 0 : index
    %7 = vector.load %arg8[%c0_5, %c0_6] : memref<2x32xf32, #tpu.memory_space<vmem>>, vector<2x32xf32>
    tpu.vector_store %arg8[%c0_5, %c0_6], %6 {strides = array<i32>} : memref<2x32xf32, #tpu.memory_space<vmem>>, vector<2x32xf32>,
    %c0_i32_7 = arith.constant 0 : i32
    %8 = arith.cmpi eq, %arg1, %c0_i32_7 : i32
    %9 = arith.extui %8 : i1 to i32
    %c0_i32_8 = arith.constant 0 : i32
    %10 = arith.cmpi ne, %9, %c0_i32_8 : i32
    scf.if %10 {
      %c0_9 = arith.constant 0 : index
      %c0_10 = arith.constant 0 : index
      %11 = vector.load %arg8[%c0_9, %c0_10] : memref<2x32xf32, #tpu.memory_space<vmem>>, vector<2x32xf32>
      %cst_11 = arith.constant 3.906250e-03 : f32
      %12 = vector.broadcast %cst_11 : f32 to vector<2x32xf32>
      %13 = arith.mulf %11, %12 : vector<2x32xf32>
      %c0_12 = arith.constant 0 : index
      %c0_13 = arith.constant 0 : index
      %14 = vector.load %arg3[%c0_12, %c0_13] : memref<32x4xf32, #tpu.memory_space<vmem>>, vector<32x4xf32>
      %cst_14 = arith.constant dense<0.000000e+00> : vector<2x4xf32>
      %15 = tpu.matmul %13, %14, %cst_14 {dimension_numbers = #tpu.dot_dimension_numbers<[1], [0], [0], [1], [0, 0, 1, 1], [], []>} : vector<2x32xf32>, vector<32x4xf32>, vector<2x4xf32> -> vector<2x4xf32>
      %c0_15 = arith.constant 0 : index
      %c0_16 = arith.constant 0 : index
      %16 = vector.load %arg4[%c0_15, %c0_16] : memref<1x4xf32, #tpu.memory_space<vmem>>, vector<1x4xf32>
      %17 = vector.broadcast %16 : vector<1x4xf32> to vector<2x4xf32>
      %18 = arith.addf %15, %17 : vector<2x4xf32>
      %cst_17 = arith.constant 0.000000e+00 : f32
      %19 = vector.broadcast %cst_17 : f32 to vector<2x4xf32>
      %20 = arith.maximumf %18, %19 : vector<2x4xf32>
      %c0_18 = arith.constant 0 : index
      %c0_19 = arith.constant 0 : index
      %21 = vector.load %arg5[%c0_18, %c0_19] : memref<4x32xf32, #tpu.memory_space<vmem>>, vector<4x32xf32>
      %cst_20 = arith.constant dense<0.000000e+00> : vector<2x32xf32>
      %22 = tpu.matmul %20, %21, %cst_20 {dimension_numbers = #tpu.dot_dimension_numbers<[1], [0], [0], [1], [0, 0, 1, 1], [], []>} : vector<2x4xf32>, vector<4x32xf32>, vector<2x32xf32> -> vector<2x32xf32>
      %c0_21 = arith.constant 0 : index
      %c0_22 = arith.constant 0 : index
      %23 = vector.load %arg6[%c0_21, %c0_22] : memref<1x32xf32, #tpu.memory_space<vmem>>, vector<1x32xf32>
      %24 = vector.broadcast %23 : vector<1x32xf32> to vector<2x32xf32>
      %25 = arith.addf %22, %24 : vector<2x32xf32>
      %c0_23 = arith.constant 0 : index
      %c0_24 = arith.constant 0 : index
      %26 = vector.load %arg7[%c0_23, %c0_24] : memref<2x32xf32, #tpu.memory_space<vmem>>, vector<2x32xf32>
      tpu.vector_store %arg7[%c0_23, %c0_24], %25 {strides = array<i32>} : memref<2x32xf32, #tpu.memory_space<vmem>>, vector<2x32xf32>,
    } else {
    }
    return
  }
  func.func @transform_0(%arg0: i32, %arg1: i32) -> (i32, i32, i32) {
    %c0_i32 = arith.constant 0 : i32
    %c0_i32_0 = arith.constant 0 : i32
    return %arg0, %c0_i32, %arg1 : i32, i32, i32
  }
  func.func @transform_1(%arg0: i32, %arg1: i32) -> (i32, i32) {
    %c0_i32 = arith.constant 0 : i32
    %c0_i32_0 = arith.constant 0 : i32
    %c0_i32_1 = arith.constant 0 : i32
    return %c0_i32, %c0_i32_0 : i32, i32
  }
  func.func @transform_2(%arg0: i32, %arg1: i32) -> (i32, i32) {
    %c0_i32 = arith.constant 0 : i32
    %c0_i32_0 = arith.constant 0 : i32
    %c0_i32_1 = arith.constant 0 : i32
    return %c0_i32, %c0_i32_0 : i32, i32
  }
  func.func @transform_3(%arg0: i32, %arg1: i32) -> (i32, i32) {
    %c0_i32 = arith.constant 0 : i32
    %c0_i32_0 = arith.constant 0 : i32
    %c0_i32_1 = arith.constant 0 : i32
    return %c0_i32, %c0_i32_0 : i32, i32
  }
  func.func @transform_4(%arg0: i32, %arg1: i32) -> (i32, i32) {
    %c0_i32 = arith.constant 0 : i32
    %c0_i32_0 = arith.constant 0 : i32
    %c0_i32_1 = arith.constant 0 : i32
    return %c0_i32, %c0_i32_0 : i32, i32
  }
  func.func @transform_5(%arg0: i32, %arg1: i32) -> (i32, i32) {
    %c0_i32 = arith.constant 0 : i32
    %c0_i32_0 = arith.constant 0 : i32
    return %arg0, %c0_i32 : i32, i32
  }
}

</mosaic_0001>

<bundles_post_ra>
// kernel: tpu_custom_call.1
= control target key start
LH: loop header
LB: loop body
LE: loop exit
PB: predicated region body
PF: predicated region fallthrough
CT: control target
= control target key end

     0   :  { %10 = vsyncpa [#allocation4], 0  ;;  %s336_s0 = inlined_call_operand.hbm [shape: f32[2,32,256], index: 0, kind: input, shape index: {}]   ;;  %s337_s1 = inlined_call_operand.vmem [shape: f32[32,4], index: 1, kind: input, shape index: {}]   ;;  %s338_s2 = inlined_call_operand.vmem [shape: f32[1,4], index: 2, kind: input, shape index: {}]   ;;  %s339_s3 = inlined_call_operand.vmem [shape: f32[4,32], index: 3, kind: input, shape index: {}]   ;;  %s340_s4 = inlined_call_operand.vmem [shape: f32[1,32], index: 4, kind: input, shape index: {}]   ;;  %s341_s5 = inlined_call_operand.hbm [shape: f32[2,32], index: 5, kind: output, shape index: {}]  }
   0x1   :  { %11 = vsyncpa [#allocation5], 0  ;;  %s16_s20 = sshll.u32 %s336_s0, 4  ;;  %s271_s21 = smov [#allocation3]   ;;  %s17_s20 = int_to_ptr.hbm [resolvable:$true] %s16_s20 }
   0x2   :  { %s18_s22 = sshll.u32 %s271_s21, 4  ;;  %s272_s23 = smov 256   ;;  %s19_s22 = int_to_ptr.vmem [resolvable:$true] %s18_s22 }
   0x3   :  { %s273_s24 = smov 16  }
   0x4   :  { %24 = dma.hbm_to_vmem [thread:$0]  %s17_s20, 2048, %s19_s22, [#allocation4], %s272_s23, %s272_s23, %s273_s24  }
   0x5   :  { %267 = dma.done.wait [#allocation4], 2048  }
   0x6   :  { %268 = vsyncadd [#allocation4], 4294965248  ;;  %v52_v0 = vld [vmem:[#allocation3 + $0x40] sm:$0xff]  ;;  %v53_v1 = vld [vmem:[#allocation3 + $0x48] sm:$0xff]  ;;  %vm41_vm0 = vcmask 254976   ;;  %v274_v24 = vmov 0.0   ;;  %v92_v30 = vlaneseq }
   0x7   :  { %v44_v2 = vld [vmem:[#allocation3] sm:$0xff]  ;;  %v72_v3 = vadd.f32 %v53_v1, %v52_v0  ;;  %v45_v4 = vld [vmem:[#allocation3 + $0x8] sm:$0xff]  ;;  %v54_v9 = vld [vmem:[#allocation3 + $0x50] sm:$0xff]  ;;  %42 = vst.msk [vmem:[#allocation2] sm:$0x3] %vm41_vm0, %v274_v24  ;;  %vm97_vm1 = vcmask 130112  }
   0x8   :  { %v48_v5 = vld [vmem:[#allocation3 + $0x20] sm:$0xff]  ;;  %v49_v6 = vld [vmem:[#allocation3 + $0x28] sm:$0xff]  ;;  %v60_v7 = vadd.f32 %v45_v4, %v44_v2  ;;  %v55_v10 = vld [vmem:[#allocation3 + $0x58] sm:$0xff]  ;;  %v93_v33 = vand.u32 127, %v92_v30  ;;  %vm101_vm2 = vcmask 195712   ;;  %vm105_vm3 = vcmask 261312  }
   0x9   :  { %v66_v8 = vadd.f32 %v49_v6, %v48_v5  ;;  %73 = vadd.xlane.f32.xlu1 %v72_v3  ;;  %v46_v11 = vld [vmem:[#allocation3 + $0x10] sm:$0xff]  ;;  %v47_v12 = vld [vmem:[#allocation3 + $0x18] sm:$0xff]  ;;  %v56_v13 = vld [vmem:[#allocation3 + $0x60] sm:$0xff]  ;;  %v75_v15 = vadd.f32 %v55_v10, %v54_v9  ;;  %vm114_vm4 = vcmask 1041409   ;;  %vm133_vm5 = vcmask 261120   ;;  %s275_s12 = smov [#allocation6]  }
   0xa   :  { %61 = vadd.xlane.f32.xlu0 %v60_v7  ;;  %v57_v14 = vld [vmem:[#allocation3 + $0x68] sm:$0xff]  ;;  %v63_v16 = vadd.f32 %v47_v12, %v46_v11  ;;  %v58_v18 = vld [vmem:[#allocation3 + $0x70] sm:$0xff]  ;;  %v59_v19 = vld [vmem:[#allocation3 + $0x78] sm:$0xff]  ;;  %v95_v34 = vadd.s32 4294967288, %v93_v33  ;;  %v99_v39 = vadd.s32 4294967280, %v93_v33  ;;  %v103_v42 = vadd.s32 4294967272, %v93_v33 }
   0xb   :  { %67 = vadd.xlane.f32.xlu2 %v66_v8  ;;  %v78_v17 = vadd.f32 %v57_v14, %v56_v13  ;;  %v50_v20 = vld [vmem:[#allocation3 + $0x30] sm:$0xff]  ;;  %v51_v21 = vld [vmem:[#allocation3 + $0x38] sm:$0xff]  ;;  %v81_v22 = vadd.f32 %v59_v19, %v58_v18  ;;  %v126_v27 = vld [vmem:[%s337_s1 + $0x8] sm:$0xff]  ;;  %vm167_vm6 = vcmask 1043456   ;;  %vm163_vm7 = vcmask 31744   ;;  %s197_s13 = sshll.u32 %s275_s12, 4  ;;  %s198_s13 = int_to_ptr.vmem [resolvable:$true] %s197_s13 }
   0xc   :  { %v69_v23 = vadd.f32 %v51_v21, %v50_v20  ;;  %v128_v25 = vld [vmem:[%s337_s1 + $0x18] sm:$0xff]  ;;  %v127_v26 = vld [vmem:[%s337_s1 + $0x10] sm:$0xff]  ;;  %v125_v28 = vld [vmem:[%s337_s1] sm:$0xff] }
   0xd   :  { %149 = vmatpush.msra.mxu0 %v128_v25  ;;  %v158_v61 = vld [vmem:[%s339_s3] sm:$0xf]  ;;  %s199_s3 = sshll.u32 %s341_s5, 4  ;;  %s200_s3 = int_to_ptr.hbm [resolvable:$true] %s199_s3 }
   0xe   :  { %v43_v55 = vld [vmem:[#allocation2] sm:$0x3]  ;;  %210 = vmatpush.msk.msra.mxu1 %vm167_vm6, %v158_v61 }
   0xf   :  { %150 = vmatpush.msra.mxu0 %v127_v26  ;;  %v217_v62 = vld [vmem:[%s338_s2] ss:$0 sm:$0xff] }
  0x10   :  { %v218_v2 = vld [vmem:[%s340_s4] ss:$0 sm:$0xff] }
  0x11   :  { %76 = vadd.xlane.f32.xlu1 %v75_v15  ;;  %151 = vmatpush.msra.mxu0 %v126_v27 }
  0x12   :  { %64 = vadd.xlane.f32.xlu0 %v63_v16 }
  0x13   :  { %79 = vadd.xlane.f32.xlu2 %v78_v17  ;;  %152 = vmatpush.msra.mxu0 %v125_v28 }
  0x19   :  { %82 = vadd.xlane.f32.xlu1 %v81_v22 }
  0x1a   :  { %70 = vadd.xlane.f32.xlu0 %v69_v23 }
  0x7c   :  { %v74_v29 = vpop.xlane.xlu1 %73 }
  0x7d   :  { %v62_v31 = vpop.xlane.xlu0 %61  ;;  %v107_v41 = vperm.slane %v74_v29, %v93_v33 }
  0x7e   :  { %v68_v32 = vpop.xlane.xlu2 %67  ;;  %v94_v43 = vperm.slane %v62_v31, %v93_v33 }
  0x7f   :  { %v100_v48 = vperm.slane %v68_v32, %v99_v39 }
  0x84   :  { %v77_v35 = vpop.xlane.xlu1 %76 }
  0x85   :  { %v65_v36 = vpop.xlane.xlu0 %64  ;;  %v108_v37 = vperm.slane %v77_v35, %v95_v34 }
  0x86   :  { %v80_v38 = vpop.xlane.xlu2 %79  ;;  %v96_v40 = vperm.slane %v65_v36, %v95_v34 }
  0x87   :  { %v110_v44 = vperm.slane %v80_v38, %v99_v39  ;;  %v109_v45 = vsel %vm97_vm1, %v108_v37, %v107_v41 }
  0x88   :  { %v98_v46 = vsel %vm97_vm1, %v96_v40, %v94_v43 }
  0x89   :  { %v111_v51 = vsel %vm101_vm2, %v110_v44, %v109_v45  ;;  %v102_v54 = vsel %vm101_vm2, %v100_v48, %v98_v46 }
  0x8c   :  { %v83_v47 = vpop.xlane.xlu1 %82 }
  0x8d   :  { %v112_v49 = vperm.slane %v83_v47, %v103_v42  ;;  %v71_v50 = vpop.xlane.xlu0 %70 }
  0x8e   :  { %v104_v52 = vperm.slane %v71_v50, %v103_v42 }
  0x8f   :  { %v113_v53 = vsel %vm105_vm3, %v112_v49, %v111_v51 }
  0x90   :  { %v106_v56 = vsel %vm105_vm3, %v104_v52, %v102_v54 }
  0x91   :  { %v115_v57 = vsel %vm114_vm4, %v113_v53, %v106_v56 }
  0x92   :  { %v117_v58 = vadd.f32 %v115_v57, %v43_v55 }
  0x94   :  { %119 = vst.msk [vmem:[#allocation2] sm:$0x3] %vm41_vm0, %v117_v58 }
  0x9b   :  { %v123_v59 = vld [vmem:[#allocation2] sm:$0x3] }
  0x9c   :  { %v124_v60 = vmul.f32 0.00390625, %v123_v59 }
  0x9e   :  { %209 = vmatmul.msk.f32.vlgmr.msra.gmra.mxu0 %vm133_vm5, %v124_v60 }
 0x11b   :  { %v154_v63 = vpop.f32.mrf.mxu0 }
 0x11c   :  { %v155_v0 = vadd.f32 %v217_v62, %v154_v63 }
 0x11e   :  { %v157_v1 = vmax.f32 %v155_v0, 0.0 }
 0x120   :  { %211 = vmatmul.msk.f32.vlgmr.msra.gmra.mxu1 %vm163_vm7, %v157_v1 }
 0x19d   :  { %v188_v3 = vpop.f32.mrf.mxu1 }
 0x19e   :  { %v189_v4 = vadd.f32 %v218_v2, %v188_v3 }
 0x1a0   :  { %191 = vst.msk [vmem:[#allocation6] sm:$0x3] %vm41_vm0, %v189_v4 }
 0x1a1   :  { %202 = dma.vmem_to_hbm [thread:$0]  %s198_s13, 32, %s200_s3, [#allocation5]  }
 0x1a2   :  { %269 = dma.done.wait [#allocation5], 32  }
 0x1a3   :  { %270 = vsyncadd [#allocation5], 4294967264 }
 0x1a4   :  { %207 = vsyncpa [#allocation4], 1 }
 0x1a5   :  { %208 = vsyncpa [#allocation5], 1 }

</bundles_post_ra>
